<compile_context>
chip_gen: v7x
topology: tpu7x:2x2x1
jax: 0.10.0
libtpu: 0.0.40
codegen_flags: <defaults>
</compile_context>

<pallas_src>
import math
from functools import partial

import jax
import jax.numpy as jnp
import numpy as np
from jax.experimental import pallas as pl
from jax.experimental.pallas import tpu as pltpu

VMEM_LIMIT = 64 * 1024 * 1024   # explicit headroom above the 32 MiB scoped default


# ------------------------------- helpers ------------------------------------ #

def _tile(dim: int, target: int, quantum: int) -> int:
    """Largest divisor of `dim` that is <= target and a multiple of `quantum`.

    Falls back to the full dim only when dim itself is small or has no aligned
    divisor (then block == full array dim, which is always legal)."""
    if dim <= target:
        return dim
    start = target - (target % quantum)
    for t in range(start, quantum - 1, -quantum):
        if dim % t == 0:
            return t
    return dim


# ------------------------------- kernels ------------------------------------ #

def rmsnorm_matmul_kernel(x_ref, g_ref, w_ref, o_ref, xn_sc, *, eps):
    """out = (rmsnorm(x) * gamma) @ W.

    The normalized x is computed once per row tile (at the first column tile)
    into a bf16 VMEM scratch and reused for every output column tile."""
    @pl.when(pl.program_id(1) == 0)
    def _():
        x = x_ref[...].astype(jnp.float32)                      # (tm, K)
        var = jnp.mean(x * x, axis=-1, keepdims=True)
        xn = x * jax.lax.rsqrt(var + eps) * g_ref[...].astype(jnp.float32)
        xn_sc[...] = xn.astype(jnp.bfloat16)

    o_ref[...] = jnp.dot(
        xn_sc[...], w_ref[...],
        preferred_element_type=jnp.float32).astype(o_ref.dtype)


def rmsnorm_gate_up_kernel(x_ref, g_ref, wg_ref, wu_ref, o_ref, xn_sc, *, eps):
    """out = silu(rmsnorm(x) @ Wg) * (rmsnorm(x) @ Wu)   (fused ln2 + gate/up)."""
    @pl.when(pl.program_id(1) == 0)
    def _():
        x = x_ref[...].astype(jnp.float32)
        var = jnp.mean(x * x, axis=-1, keepdims=True)
        xn_sc[...] = (x * jax.lax.rsqrt(var + eps)
                      * g_ref[...].astype(jnp.float32)).astype(jnp.bfloat16)

    xn = xn_sc[...]
    gate = jnp.dot(xn, wg_ref[...], preferred_element_type=jnp.float32)
    up = jnp.dot(xn, wu_ref[...], preferred_element_type=jnp.float32)
    o_ref[...] = (gate * jax.nn.sigmoid(gate) * up).astype(o_ref.dtype)


def matmul_residual_kernel(x_ref, w_ref, r_ref, o_ref, acc_ref):
    """out = x @ W + residual, K-tiled with an fp32 VMEM accumulator."""
    k = pl.program_id(2)

    @pl.when(k == 0)
    def _():
        acc_ref[...] = jnp.zeros_like(acc_ref)

    acc_ref[...] += jnp.dot(
        x_ref[...].astype(jnp.bfloat16), w_ref[...],
        preferred_element_type=jnp.float32)

    @pl.when(k == pl.num_programs(2) - 1)
    def _():
        o_ref[...] = (acc_ref[...] + r_ref[...].astype(jnp.float32)).astype(o_ref.dtype)


def flash_attention_kernel(q_ref, k_ref, v_ref, cosq_ref, sinq_ref, cosk_ref, sink_ref,
                           o_ref, m_sc, l_sc, acc_sc, qrot_sc,
                           *, scale, n_rep, tq, tk, head_dim):
    """One (batch, kv-head, q-tile) group: online-softmax causal attention.

    q_ref   : (tq, n_rep*D)  the n_rep query heads sharing this KV head
    k_ref   : (tk, D)        current KV tile (keys)
    v_ref   : (tk, D)        current KV tile (values)
    cos/sin : rotary tables sliced for the q tile / k tile
    o_ref   : (tq, n_rep*D)  attention output for the same query heads

    All n_rep heads are stacked along rows (n_rep*tq, ...) so QK^T and PV are
    single big matmuls per KV tile.
    """
    qi = pl.program_id(2)
    j = pl.program_id(3)
    nk = pl.num_programs(3)
    D = head_dim

    def rotate_half(x):
        return jnp.concatenate([-x[:, D // 2:], x[:, :D // 2]], axis=-1)

    def rope(x, c, s):
        return x * c + rotate_half(x) * s

    @pl.when(j == 0)
    def _init():
        m_sc[...] = jnp.full(m_sc.shape, -1e30, dtype=m_sc.dtype)
        l_sc[...] = jnp.zeros(l_sc.shape, dtype=l_sc.dtype)
        acc_sc[...] = jnp.zeros(acc_sc.shape, dtype=acc_sc.dtype)
        # RoPE each query head once and stack (head-major) for all KV tiles.
        cos_q = cosq_ref[...].astype(jnp.float32)
        sin_q = sinq_ref[...].astype(jnp.float32)
        q = q_ref[...].astype(jnp.float32)
        for r in range(n_rep):
            qh = q[:, r * D:(r + 1) * D]
            qrot_sc[r * tq:(r + 1) * tq, :] = rope(qh, cos_q, sin_q).astype(jnp.bfloat16)

    # Causal tile skip: this KV tile is entirely in the future iff
    # its first key position exceeds the last query position of the q tile.
    @pl.when(j * tk <= qi * tq + (tq - 1))
    def _compute():
        cos_k = cosk_ref[...].astype(jnp.float32)
        sin_k = sink_ref[...].astype(jnp.float32)
        k = k_ref[...].astype(jnp.float32)
        k_rot = rope(k, cos_k, sin_k).astype(jnp.bfloat16)
        v_b = v_ref[...].astype(jnp.bfloat16)

        q_all = qrot_sc[...]                                      # (n_rep*tq, D)
        s = jax.lax.dot_general(
            q_all, k_rot, (((1,), (1,)), ((), ())),
            preferred_element_type=jnp.float32) * scale            # (n_rep*tq, tk)

        # Causal mask generated in-kernel. All heads share the same (tq, tk)
        # pattern; replicate the local-row iota along sublanes (no vector mod).
        col_ids = jax.lax.broadcasted_iota(jnp.int32, (n_rep * tq, tk), 1)
        row_local = jax.lax.broadcasted_iota(jnp.int32, (tq, tk), 0)
        if n_rep > 1:
            row_local = jnp.concatenate([row_local] * n_rep, axis=0)
        allowed = (j * tk + col_ids) <= (qi * tq + row_local)
        s = jnp.where(allowed, s, -1e30)

        m_prev = m_sc[...]
        m_new = jnp.maximum(m_prev, jnp.max(s, axis=-1, keepdims=True))
        alpha = jnp.exp(m_prev - m_new)
        p = jnp.exp(s - m_new)
        l_sc[...] = alpha * l_sc[...] + jnp.sum(p, axis=-1, keepdims=True)
        acc_sc[...] = alpha * acc_sc[...] + jnp.dot(
            p.astype(jnp.bfloat16), v_b, preferred_element_type=jnp.float32)
        m_sc[...] = m_new

    @pl.when(j == nk - 1)
    def _finalize():
        inv_l = pl.reciprocal(l_sc[...], approx=True)
        o = acc_sc[...] * inv_l                                    # (n_rep*tq, D)
        for r in range(n_rep):
            o_ref[:, r * D:(r + 1) * D] = o[r * tq:(r + 1) * tq, :].astype(o_ref.dtype)


# ------------------------------- wrappers ------------------------------------ #

def rmsnorm_matmul(x2d, gamma2d, w_bf16, eps, tm, tn):
    M, K = x2d.shape
    N = w_bf16.shape[1]
    assert M % tm == 0 and N % tn == 0
    return pl.pallas_call(
        partial(rmsnorm_matmul_kernel, eps=eps),
        out_shape=jax.ShapeDtypeStruct((M, N), jnp.bfloat16),
        grid=(M // tm, N // tn),
        in_specs=[
            pl.BlockSpec((tm, K), lambda i, j: (i, 0)),
            pl.BlockSpec((1, K), lambda i, j: (0, 0)),
            pl.BlockSpec((K, tn), lambda i, j: (0, j)),
        ],
        out_specs=pl.BlockSpec((tm, tn), lambda i, j: (i, j)),
        scratch_shapes=[pltpu.VMEM((tm, K), jnp.bfloat16)],
        compiler_params=pltpu.CompilerParams(
            dimension_semantics=("parallel", "arbitrary"),
            vmem_limit_bytes=VMEM_LIMIT),
    )(x2d, gamma2d, w_bf16)


def rmsnorm_gate_up(x2d, gamma2d, wg_bf16, wu_bf16, eps, tm, tn):
    M, K = x2d.shape
    N = wg_bf16.shape[1]
    assert M % tm == 0 and N % tn == 0
    return pl.pallas_call(
        partial(rmsnorm_gate_up_kernel, eps=eps),
        out_shape=jax.ShapeDtypeStruct((M, N), jnp.bfloat16),
        grid=(M // tm, N // tn),
        in_specs=[
            pl.BlockSpec((tm, K), lambda i, j: (i, 0)),
            pl.BlockSpec((1, K), lambda i, j: (0, 0)),
            pl.BlockSpec((K, tn), lambda i, j: (0, j)),
            pl.BlockSpec((K, tn), lambda i, j: (0, j)),
        ],
        out_specs=pl.BlockSpec((tm, tn), lambda i, j: (i, j)),
        scratch_shapes=[pltpu.VMEM((tm, K), jnp.bfloat16)],
        compiler_params=pltpu.CompilerParams(
            dimension_semantics=("parallel", "arbitrary"),
            vmem_limit_bytes=VMEM_LIMIT),
    )(x2d, gamma2d, wg_bf16, wu_bf16)


def matmul_residual(x2d, w_bf16, residual, tm, tn, tk):
    M, K = x2d.shape
    N = w_bf16.shape[1]
    assert M % tm == 0 and N % tn == 0 and K % tk == 0
    return pl.pallas_call(
        matmul_residual_kernel,
        out_shape=jax.ShapeDtypeStruct((M, N), jnp.float32),
        grid=(M // tm, N // tn, K // tk),
        in_specs=[
            pl.BlockSpec((tm, tk), lambda i, j, k: (i, k)),
            pl.BlockSpec((tk, tn), lambda i, j, k: (k, j)),
            pl.BlockSpec((tm, tn), lambda i, j, k: (i, j)),
        ],
        out_specs=pl.BlockSpec((tm, tn), lambda i, j, k: (i, j)),
        scratch_shapes=[pltpu.VMEM((tm, tn), jnp.float32)],
        compiler_params=pltpu.CompilerParams(
            dimension_semantics=("parallel", "parallel", "arbitrary"),
            vmem_limit_bytes=VMEM_LIMIT),
    )(x2d, w_bf16, residual)


def flash_attention(qkv, cos, sin, *, B, S, Hq, Hkv, D, tq, tk):
    """qkv is the fused projection output [B*S, (Hq + 2*Hkv)*D]; q/k/v slices are
    addressed purely through BlockSpec column-block offsets (no copies)."""
    assert Hq % Hkv == 0 and S % tq == 0 and S % tk == 0 and D % 2 == 0
    n_rep = Hq // Hkv
    n_q = S // tq
    n_kv = S // tk
    kernel = partial(flash_attention_kernel, scale=1.0 / math.sqrt(D),
                     n_rep=n_rep, tq=tq, tk=tk, head_dim=D)
    return pl.pallas_call(
        kernel,
        out_shape=jax.ShapeDtypeStruct((B * S, Hq * D), jnp.bfloat16),
        grid=(B, Hkv, n_q, n_kv),
        in_specs=[
            # n_rep query heads of this KV group, rows of the current q tile
            pl.BlockSpec((tq, n_rep * D), lambda b, h, qi, j: (b * n_q + qi, h)),
            # K tile: rows (b*S + j*tk ...), cols at offset (Hq + h)*D
            pl.BlockSpec((tk, D), lambda b, h, qi, j: (b * n_kv + j, Hq + h)),
            # V tile: cols at offset (Hq + Hkv + h)*D
            pl.BlockSpec((tk, D), lambda b, h, qi, j: (b * n_kv + j, Hq + Hkv + h)),
            pl.BlockSpec((tq, D), lambda b, h, qi, j: (qi, 0)),   # cos for q tile
            pl.BlockSpec((tq, D), lambda b, h, qi, j: (qi, 0)),   # sin for q tile
            pl.BlockSpec((tk, D), lambda b, h, qi, j: (j, 0)),    # cos for k tile
            pl.BlockSpec((tk, D), lambda b, h, qi, j: (j, 0)),    # sin for k tile
        ],
        out_specs=pl.BlockSpec((tq, n_rep * D), lambda b, h, qi, j: (b * n_q + qi, h)),
        scratch_shapes=[
            pltpu.VMEM((n_rep * tq, 1), jnp.float32),      # running max
            pltpu.VMEM((n_rep * tq, 1), jnp.float32),      # running denom
            pltpu.VMEM((n_rep * tq, D), jnp.float32),      # output accumulator
            pltpu.VMEM((n_rep * tq, D), jnp.bfloat16),     # cached RoPE'd q
        ],
        compiler_params=pltpu.CompilerParams(
            dimension_semantics=("parallel", "parallel", "parallel", "arbitrary"),
            vmem_limit_bytes=VMEM_LIMIT),
    )(qkv, qkv, qkv, cos, sin, cos, sin)


# --------------------------- parameter preparation --------------------------- #

def prepare_llama_params(raw):
    """One-time weight prep (fused QKV concat + bf16 casts), hoisted out of the
    per-call forward so no HBM concat/cast traffic happens per layer call."""
    return {
        "ln1_w": raw["ln1_w"].astype(jnp.float32).reshape(1, -1),
        "ln2_w": raw["ln2_w"].astype(jnp.float32).reshape(1, -1),
        "w_qkv": jnp.concatenate(
            [raw["wq"], raw["wk"], raw["wv"]], axis=1).astype(jnp.bfloat16),
        "wo": raw["wo"].astype(jnp.bfloat16),
        "wg": raw["wg"].astype(jnp.bfloat16),
        "wu": raw["wu"].astype(jnp.bfloat16),
        "wd": raw["wd"].astype(jnp.bfloat16),
    }


# --------------------------- decoder-layer forward --------------------------- #

def llama_decoder_layer(hidden_states, cos, sin, params, cfg):
    """hidden_states: (B, S, H) fp32; cos/sin: (S, D) rotary tables;
    params: output of prepare_llama_params()."""
    B, S, H = hidden_states.shape
    Hq, Hkv, D = cfg["num_heads"], cfg["num_kv_heads"], cfg["head_dim"]
    eps = cfg["rms_norm_eps"]
    M = B * S

    x2d = hidden_states.reshape(M, H)

    w_qkv, wo = params["w_qkv"], params["wo"]
    wg, wu, wd = params["wg"], params["wu"], params["wd"]
    N_qkv = w_qkv.shape[1]
    I = wg.shape[1]

    # --- tile selection (hardware-aligned divisors) ---
    tm = _tile(M, 256, 8)                 # token/row tile
    tq = _tile(S, 256, 8)                 # attention query tile
    tk_s = _tile(S, 512, 8)               # attention KV tile
    tn_qkv = _tile(N_qkv, 512, 128)       # fused QKV output tile
    tn_h = _tile(H, 256, 128)             # hidden-dim output tile
    tk_h = _tile(H, 512, 128)             # hidden-dim reduction tile
    tn_i = _tile(I, 256, 128)             # intermediate output tile (v7x-safe)
    tk_i = _tile(I, 512, 128)             # intermediate reduction tile

    # --- self-attention block ---
    qkv = rmsnorm_matmul(x2d, params["ln1_w"], w_qkv, eps, tm, tn_qkv)   # ln1 + QKV
    attn = flash_attention(qkv, cos, sin,
                           B=B, S=S, Hq=Hq, Hkv=Hkv, D=D, tq=tq, tk=tk_s)
    h1 = matmul_residual(attn, wo, x2d, tm, tn_h, tk_h)                  # o_proj + res

    # --- MLP block ---
    h = rmsnorm_gate_up(h1, params["ln2_w"], wg, wu, eps, tm, tn_i)      # ln2 + gate/up
    out = matmul_residual(h, wd, h1, tm, tn_h, tk_i)                     # down + res

    return out.reshape(B, S, H)


# -------------------------------- reference ---------------------------------- #

def ref_decoder_layer(x, cos, sin, params, cfg):
    B, S, H = x.shape
    Hq, Hkv, D = cfg["num_heads"], cfg["num_kv_heads"], cfg["head_dim"]
    n_rep = Hq // Hkv
    eps = cfg["rms_norm_eps"]
    hp = jax.lax.Precision.HIGHEST

    def rms(h, w):
        var = jnp.mean(h.astype(jnp.float32) ** 2, axis=-1, keepdims=True)
        return h * jax.lax.rsqrt(var + eps) * w

    def rotate_half(t):
        return jnp.concatenate([-t[..., D // 2:], t[..., :D // 2]], axis=-1)

    residual = x
    hn = rms(x, params["ln1_w"])
    q = jnp.einsum("bsh,ho->bso", hn, params["wq"], precision=hp).reshape(B, S, Hq, D).transpose(0, 2, 1, 3)
    k = jnp.einsum("bsh,ho->bso", hn, params["wk"], precision=hp).reshape(B, S, Hkv, D).transpose(0, 2, 1, 3)
    v = jnp.einsum("bsh,ho->bso", hn, params["wv"], precision=hp).reshape(B, S, Hkv, D).transpose(0, 2, 1, 3)

    c = cos[None, None, :, :]
    s = sin[None, None, :, :]
    q = q * c + rotate_half(q) * s
    k = k * c + rotate_half(k) * s
    k = jnp.repeat(k, n_rep, axis=1)
    v = jnp.repeat(v, n_rep, axis=1)

    i = jnp.arange(S)[:, None]
    j = jnp.arange(S)[None, :]
    mask = jnp.where(j <= i, 0.0, -1e9).astype(jnp.float32)
    scores = jnp.einsum("bhqd,bhkd->bhqk", q, k, precision=hp) / math.sqrt(D) + mask
    w = jax.nn.softmax(scores.astype(jnp.float32), axis=-1)
    attn = jnp.einsum("bhqk,bhkd->bhqd", w, v, precision=hp)
    attn = attn.transpose(0, 2, 1, 3).reshape(B, S, H)
    h1 = residual + jnp.einsum("bsh,ho->bso", attn, params["wo"], precision=hp)

    hn2 = rms(h1, params["ln2_w"])
    g = jnp.einsum("bsh,hi->bsi", hn2, params["wg"], precision=hp)
    u = jnp.einsum("bsh,hi->bsi", hn2, params["wu"], precision=hp)
    return h1 + jnp.einsum("bsi,ih->bsh", jax.nn.silu(g) * u, params["wd"], precision=hp)


# ----------------------------------- main ------------------------------------ #

if __name__ == "__main__":
    # Small LlamaConfig-consistent shapes.
    B, S = 2, 16
    H = 256                 # hidden_size
    Hq = 2                  # num_attention_heads
    Hkv = 1                 # num_key_value_heads (GQA, n_rep = 2)
    D = H // Hq             # head_dim = 128
    I = 512                 # intermediate_size
    cfg = dict(num_heads=Hq, num_kv_heads=Hkv, head_dim=D,
               rms_norm_eps=1e-6, rope_theta=10000.0)

    key = jax.random.PRNGKey(0)
    ks = jax.random.split(key, 8)

    def w(k, shape):
        return jax.random.normal(k, shape, dtype=jnp.float32) * 0.02

    params = {
        "ln1_w": jnp.ones((H,), jnp.float32),
        "ln2_w": jnp.ones((H,), jnp.float32),
        "wq": w(ks[0], (H, Hq * D)),
        "wk": w(ks[1], (H, Hkv * D)),
        "wv": w(ks[2], (H, Hkv * D)),
        "wo": w(ks[3], (H, H)),
        "wg": w(ks[4], (H, I)),
        "wu": w(ks[5], (H, I)),
        "wd": w(ks[6], (I, H)),
    }

    hidden_states = jax.random.normal(ks[7], (B, S, H), dtype=jnp.float32)

    # Rotary position embeddings (cos, sin) as a single (S, head_dim) table.
    inv_freq = 1.0 / (cfg["rope_theta"] ** (jnp.arange(0, D, 2, dtype=jnp.float32) / D))
    pos = jnp.arange(S, dtype=jnp.float32)
    freqs = jnp.outer(pos, inv_freq)                       # (S, D/2)
    emb = jnp.concatenate([freqs, freqs], axis=-1)         # (S, D)
    cos = jnp.cos(emb).astype(jnp.float32)
    sin = jnp.sin(emb).astype(jnp.float32)

    # One-time weight prep (hoisted out of the forward).
    prepped = prepare_llama_params(params)

    out = llama_decoder_layer(hidden_states, cos, sin, prepped, cfg)
    out = jax.block_until_ready(out)

    ref = ref_decoder_layer(hidden_states, cos, sin, params, cfg)
    assert out.shape == (B, S, H)
    assert bool(jnp.all(jnp.isfinite(out)))
    np.testing.assert_allclose(np.asarray(out), np.asarray(ref), atol=3e-2, rtol=3e-2)

    print("KERNEL_OK")
</pallas_src>

<mosaic_0001>
module attributes {stable_mosaic.version = 11 : i64} {
  func.func @rmsnorm_matmul_kernel(%arg0: i32, %arg1: i32, %arg2: memref<32x256xf32, #tpu.memory_space<vmem>>, %arg3: memref<1x256xf32, #tpu.memory_space<vmem>>, %arg4: memref<256x512xbf16, #tpu.memory_space<vmem>>, %arg5: memref<32x512xbf16, #tpu.memory_space<vmem>>, %arg6: memref<32x256xbf16, #tpu.memory_space<vmem>>) attributes {dimension_semantics = [#tpu.dimension_semantics<parallel>, #tpu.dimension_semantics<arbitrary>], iteration_bounds = array<i64: 1, 1>, scalar_prefetch = 0 : i64, scratch_operands = 1 : i64, tpu.core_type = #tpu.core_type<tc>, window_params = [{transform_indices = @transform_0, window_bounds = array<i64: 32, 256>}, {pipeline_mode = #tpu.pipeline_mode<synchronous>, transform_indices = @transform_1, window_bounds = array<i64: 1, 256>}, {transform_indices = @transform_2, window_bounds = array<i64: 256, 512>}, {transform_indices = @transform_3, window_bounds = array<i64: 32, 512>}]} {
    %c0_i32 = arith.constant 0 : i32
    %0 = arith.cmpi eq, %arg1, %c0_i32 : i32
    %1 = arith.extui %0 : i1 to i32
    %c0_i32_0 = arith.constant 0 : i32
    %2 = arith.cmpi ne, %1, %c0_i32_0 : i32
    scf.if %2 {
      %c0_6 = arith.constant 0 : index
      %c0_7 = arith.constant 0 : index
      %8 = vector.load %arg2[%c0_6, %c0_7] : memref<32x256xf32, #tpu.memory_space<vmem>>, vector<32x256xf32>
      %9 = arith.mulf %8, %8 : vector<32x256xf32>
      %cst_8 = arith.constant dense<0.000000e+00> : vector<32xf32>
      %10 = vector.multi_reduction <add>, %9, %cst_8 [1] : vector<32x256xf32> to vector<32xf32>
      %11 = vector.shape_cast %10 : vector<32xf32> to vector<32x1xf32>
      %cst_9 = arith.constant 2.560000e+02 : f32
      %12 = vector.broadcast %cst_9 : f32 to vector<32x1xf32>
      %13 = arith.divf %11, %12 : vector<32x1xf32>
      %cst_10 = arith.constant 9.99999997E-7 : f32
      %14 = vector.broadcast %cst_10 : f32 to vector<32x1xf32>
      %15 = arith.addf %13, %14 : vector<32x1xf32>
      %16 = math.rsqrt %15 : vector<32x1xf32>
      %17 = vector.broadcast %16 : vector<32x1xf32> to vector<32x256xf32>
      %18 = arith.mulf %8, %17 : vector<32x256xf32>
      %c0_11 = arith.constant 0 : index
      %c0_12 = arith.constant 0 : index
      %19 = vector.load %arg3[%c0_11, %c0_12] : memref<1x256xf32, #tpu.memory_space<vmem>>, vector<1x256xf32>
      %20 = vector.broadcast %19 : vector<1x256xf32> to vector<32x256xf32>
      %21 = arith.mulf %18, %20 : vector<32x256xf32>
      %22 = arith.truncf %21 : vector<32x256xf32> to vector<32x256xbf16>
      %c0_13 = arith.constant 0 : index
      %c0_14 = arith.constant 0 : index
      %23 = vector.load %arg6[%c0_13, %c0_14] : memref<32x256xbf16, #tpu.memory_space<vmem>>, vector<32x256xbf16>
      tpu.vector_store %arg6[%c0_13, %c0_14], %22 {strides = array<i32>} : memref<32x256xbf16, #tpu.memory_space<vmem>>, vector<32x256xbf16>,
    } else {
    }
    %c0 = arith.constant 0 : index
    %c0_1 = arith.constant 0 : index
    %3 = vector.load %arg6[%c0, %c0_1] : memref<32x256xbf16, #tpu.memory_space<vmem>>, vector<32x256xbf16>
    %c0_2 = arith.constant 0 : index
    %c0_3 = arith.constant 0 : index
    %4 = vector.load %arg4[%c0_2, %c0_3] : memref<256x512xbf16, #tpu.memory_space<vmem>>, vector<256x512xbf16>
    %cst = arith.constant dense<0.000000e+00> : vector<32x512xf32>
    %5 = tpu.matmul %3, %4, %cst {dimension_numbers = #tpu.dot_dimension_numbers<[1], [0], [0], [1], [0, 0, 1, 1], [], []>} : vector<32x256xbf16>, vector<256x512xbf16>, vector<32x512xf32> -> vector<32x512xf32>
    %6 = arith.truncf %5 : vector<32x512xf32> to vector<32x512xbf16>
    %c0_4 = arith.constant 0 : index
    %c0_5 = arith.constant 0 : index
    %7 = vector.load %arg5[%c0_4, %c0_5] : memref<32x512xbf16, #tpu.memory_space<vmem>>, vector<32x512xbf16>
    tpu.vector_store %arg5[%c0_4, %c0_5], %6 {strides = array<i32>} : memref<32x512xbf16, #tpu.memory_space<vmem>>, vector<32x512xbf16>,
    return
  }
  func.func @transform_0(%arg0: i32, %arg1: i32) -> (i32, i32) {
    %c0_i32 = arith.constant 0 : i32
    %c0_i32_0 = arith.constant 0 : i32
    return %arg0, %c0_i32 : i32, i32
  }
  func.func @transform_1(%arg0: i32, %arg1: i32) -> (i32, i32) {
    %c0_i32 = arith.constant 0 : i32
    %c0_i32_0 = arith.constant 0 : i32
    %c0_i32_1 = arith.constant 0 : i32
    return %c0_i32, %c0_i32_0 : i32, i32
  }
  func.func @transform_2(%arg0: i32, %arg1: i32) -> (i32, i32) {
    %c0_i32 = arith.constant 0 : i32
    %c0_i32_0 = arith.constant 0 : i32
    return %c0_i32, %arg1 : i32, i32
  }
  func.func @transform_3(%arg0: i32, %arg1: i32) -> (i32, i32) {
    %c0_i32 = arith.constant 0 : i32
    return %arg0, %arg1 : i32, i32
  }
}

</mosaic_0001>

<bundles_post_ra>
// kernel: tpu_custom_call.1
= control target key start
LH: loop header
LB: loop body
LE: loop exit
PB: predicated region body
PF: predicated region fallthrough
CT: control target
= control target key end

     0   :  { %8 = vsyncpa [#allocation4], 0  ;;  %s1117_s0 = inlined_call_operand.hbm [shape: f32[32,256], index: 0, kind: input, shape index: {}]   ;;  %s1118_s1 = inlined_call_operand.hbm [shape: f32[1,256], index: 1, kind: input, shape index: {}]   ;;  %s1119_s2 = inlined_call_operand.hbm [shape: bf16[256,512], index: 2, kind: input, shape index: {}]   ;;  %s1120_s3 = inlined_call_operand.hbm [shape: bf16[32,512], index: 3, kind: output, shape index: {}]  }
   0x1   :  { %9 = vsyncpa [#allocation7], 0 }
   0x2   :  { %10 = vsyncpa [#allocation5], 0  ;;  %s987_s12 = smov [#allocation6]   ;;  %s988_s14 = smov [#allocation3]  }
   0x3   :  { %s29_s13 = sshll.u32 %s987_s12, 4  ;;  %s16_s15 = sshll.u32 %s988_s14, 4  ;;  %s30_s13 = int_to_ptr.vmem [resolvable:$true] %s29_s13  ;;  %s1013_s15 = int_to_ptr.vmem [resolvable:$true] %s16_s15 }
   0x4   :  { %s893_s18 = scalar_lea.hbm %s1118_s1, 32 }
   0x5   :  { %p894_p0 = scmp.ne.s32.totalorder %s1118_s1, %s893_s18  ;;  %p897_p1 = scmp.lt.u32.totalorder %s893_s18, %s1118_s1 }
   0x7   :  { %p899_p2 = pnand %p897_p1, %p894_p0 }
   0x9   :  { %902 = shalt.err (!%p899_p2)
}
   0xa   :  { %s903_s23 = scalar_lea.vmem %s30_s13, 32  ;;  %p908_p4 = scmp.lt.s32.totalorder %s30_s13, %s30_s13 }
   0xb   :  { %p904_p3 = scmp.ne.s32.totalorder %s30_s13, %s903_s23  ;;  %p909_p5 = scmp.lt.s32.totalorder %s903_s23, %s903_s23 }
   0xd   :  { %p910_p6 = por %p909_p5, %p908_p4 }
   0xf   :  { %p911_p7 = pnand %p910_p6, %p904_p3 }
  0x11   :  { %914 = shalt.err (!%p911_p7)
}
  0x12   :  { %32 = dma.hbm_to_vmem [thread:$0]  %s1118_s1, 32, %s30_s13, [#allocation7]  }
  0x13   :  { %s915_s28 = scalar_lea.hbm %s1117_s0, 1024 }
  0x14   :  { %p916_p8 = scmp.ne.s32.totalorder %s1117_s0, %s915_s28  ;;  %p919_p9 = scmp.lt.u32.totalorder %s915_s28, %s1117_s0 }
  0x16   :  { %p921_p10 = pnand %p919_p9, %p916_p8 }
  0x18   :  { %924 = shalt.err (!%p921_p10)
}
  0x19   :  { %s925_s6 = scalar_lea.vmem %s1013_s15, 1024  ;;  %p930_p12 = scmp.lt.s32.totalorder %s1013_s15, %s1013_s15 }
  0x1a   :  { %p926_p11 = scmp.ne.s32.totalorder %s1013_s15, %s925_s6  ;;  %p931_p13 = scmp.lt.s32.totalorder %s925_s6, %s925_s6 }
  0x1c   :  { %p932_p0 = por %p931_p13, %p930_p12 }
  0x1e   :  { %p933_p1 = pnand %p932_p0, %p926_p11 }
  0x20   :  { %936 = shalt.err (!%p933_p1)
}
  0x21   :  { %s989_s1 = smov 256   ;;  %s990_s7 = smov 16  }
  0x22   :  { %22 = dma.hbm_to_vmem [thread:$0]  %s1117_s0, 1024, %s1013_s15, [#allocation4], %s989_s1, %s989_s1, %s990_s7  }
  0x23   :  { %s991_s10 = smov [#allocation8]   ;;  %s937_s14 = scalar_lea.hbm %s1119_s2, 8192 }
  0x24   :  { %s38_s11 = sshll.u32 %s991_s10, 4  ;;  %p938_p2 = scmp.ne.s32.totalorder %s1119_s2, %s937_s14  ;;  %s39_s11 = int_to_ptr.vmem [resolvable:$true] %s38_s11 }
  0x25   :  { %p941_p3 = scmp.lt.u32.totalorder %s937_s14, %s1119_s2 }
  0x27   :  { %p943_p4 = pnand %p941_p3, %p938_p2 }
  0x29   :  { %946 = shalt.err (!%p943_p4)
}
  0x2a   :  { %s947_s20 = scalar_lea.vmem %s39_s11, 8192  ;;  %p952_p6 = scmp.lt.s32.totalorder %s39_s11, %s39_s11 }
  0x2b   :  { %p948_p5 = scmp.ne.s32.totalorder %s39_s11, %s947_s20  ;;  %p953_p7 = scmp.lt.s32.totalorder %s947_s20, %s947_s20 }
  0x2d   :  { %p954_p8 = por %p953_p7, %p952_p6 }
  0x2f   :  { %p955_p9 = pnand %p954_p8, %p948_p5 }
  0x31   :  { %958 = shalt.err (!%p955_p9)
}
  0x32   :  { %44 = dma.hbm_to_vmem [thread:$0]  %s1119_s2, 8192, %s39_s11, [#allocation7], %s989_s1, %s989_s1, %s990_s7  }
  0x33   :  { %981 = dma.done.wait [#allocation4], 1024  }
  0x34   :  { %982 = vsyncadd [#allocation4], 4294966272 }
  0x35   :  { %983 = dma.done.wait [#allocation7], 8224  }
  0x36   :  { %984 = vsyncadd [#allocation7], 4294959072  ;;  %v1062_v0 = vld [vmem:[#allocation3] sm:$0xff]  ;;  %v1064_v1 = vld [vmem:[#allocation3 + $0x8] sm:$0xff]  ;;  %s992_s2 = smov [#allocation9]  }
  0x37   :  { %v1066_v2 = vld [vmem:[#allocation3 + $0x20] sm:$0xff]  ;;  %v66_v3 = vmul.f32 %v1062_v0, %v1062_v0  ;;  %v67_v4 = vmul.f32 %v1064_v1, %v1064_v1  ;;  %v1072_v5 = vld [vmem:[#allocation3 + $0x28] sm:$0xff]  ;;  %v1076_v7 = vld [vmem:[#allocation3 + $0x10] sm:$0xff]  ;;  %s690_s21 = sshll.u32 %s992_s2, 4  ;;  %s691_s21 = int_to_ptr.vmem [resolvable:$true] %s690_s21 }
  0x38   :  { %v70_v6 = vmul.f32 %v1066_v2, %v1066_v2  ;;  %v1078_v8 = vld [vmem:[#allocation3 + $0x18] sm:$0xff]  ;;  %v71_v9 = vmul.f32 %v1072_v5, %v1072_v5  ;;  %v68_v10 = vmul.f32 %v1076_v7, %v1076_v7  ;;  %v1086_v12 = vld [vmem:[#allocation3 + $0x30] sm:$0xff]  ;;  %s959_s22 = scalar_lea.vmem %s691_s21, 1024  ;;  %p964_p11 = scmp.lt.s32.totalorder %s691_s21, %s691_s21 }
  0x39   :  { %v69_v11 = vmul.f32 %v1078_v8, %v1078_v8  ;;  %v1088_v13 = vld [vmem:[#allocation3 + $0x38] sm:$0xff]  ;;  %v74_v14 = vadd.f32 %v67_v4, %v66_v3  ;;  %v72_v15 = vmul.f32 %v1086_v12, %v1086_v12  ;;  %v793_v20 = vld [vmem:[#allocation8] ss:$16 sps:$4 sm:$0xff]   ;;  %p960_p10 = scmp.ne.s32.totalorder %s691_s21, %s959_s22  ;;  %p965_p12 = scmp.lt.s32.totalorder %s959_s22, %s959_s22 }
  0x3a   :  { %v73_v16 = vmul.f32 %v1088_v13, %v1088_v13  ;;  %v789_v17 = vld [vmem:[#allocation8 + $0x4] ss:$16 sps:$4 sm:$0xff]   ;;  %v80_v18 = vadd.f32 %v71_v9, %v70_v6  ;;  %v791_v19 = vld [vmem:[#allocation8 + $0xc] ss:$16 sps:$4 sm:$0xff]   ;;  %v794_v22 = vld [vmem:[#allocation8 + $0x8] ss:$16 sps:$4 sm:$0xff]  }
  0x3b   :  { %75 = vadd.xlane.f32.xlu0 %v74_v14  ;;  %v77_v21 = vadd.f32 %v69_v11, %v68_v10  ;;  %523 = vmatprep.subr.bf16.mxu0 %v789_v17  ;;  %v795_v24 = vld [vmem:[#allocation8 + $0x24] ss:$16 sps:$4 sm:$0xff]   ;;  %v797_v25 = vld [vmem:[#allocation8 + $0x2c] ss:$16 sps:$4 sm:$0xff]   ;;  %v799_v26 = vld [vmem:[#allocation8 + $0x20] ss:$16 sps:$4 sm:$0xff]   ;;  %p966_p13 = por %p965_p12, %p964_p11 }
  0x3c   :  { %81 = vadd.xlane.f32.xlu1 %v80_v18  ;;  %v83_v23 = vadd.f32 %v73_v16, %v72_v15  ;;  %576 = vmatprep.subr.bf16.mxu1 %v791_v19  ;;  %v800_v27 = vld [vmem:[#allocation8 + $0x28] ss:$16 sps:$4 sm:$0xff]   ;;  %v801_v28 = vld [vmem:[#allocation8 + $0x44] ss:$16 sps:$4 sm:$0xff]   ;;  %v803_v29 = vld [vmem:[#allocation8 + $0x4c] ss:$16 sps:$4 sm:$0xff]  }
  0x3d   :  { %524 = vmatpush1.bf16.msra.mxu0 %v793_v20  ;;  %577 = vmatpush1.bf16.msra.mxu1 %v794_v22  ;;  %v805_v30 = vld [vmem:[#allocation8 + $0x40] ss:$16 sps:$4 sm:$0xff]   ;;  %v806_v31 = vld [vmem:[#allocation8 + $0x48] ss:$16 sps:$4 sm:$0xff]   ;;  %v807_v32 = vld [vmem:[#allocation8 + $0x64] ss:$16 sps:$4 sm:$0xff]   ;;  %p967_p0 = pnand %p966_p13, %p960_p10 }
  0x3e   :  { %525 = vmatprep.subr.bf16.mxu0 %v795_v24  ;;  %578 = vmatprep.subr.bf16.mxu1 %v797_v25  ;;  %v809_v33 = vld [vmem:[#allocation8 + $0x6c] ss:$16 sps:$4 sm:$0xff]   ;;  %v811_v34 = vld [vmem:[#allocation8 + $0x60] ss:$16 sps:$4 sm:$0xff]   ;;  %v812_v35 = vld [vmem:[#allocation8 + $0x68] ss:$16 sps:$4 sm:$0xff]  }
  0x3f   :  { %78 = vadd.xlane.f32.xlu0 %v77_v21  ;;  %v813_v36 = vld [vmem:[#allocation8 + $0x84] ss:$16 sps:$4 sm:$0xff]   ;;  %v815_v37 = vld [vmem:[#allocation8 + $0x8c] ss:$16 sps:$4 sm:$0xff]   ;;  %v817_v38 = vld [vmem:[#allocation8 + $0x80] ss:$16 sps:$4 sm:$0xff]  }
  0x40   :  { %84 = vadd.xlane.f32.xlu1 %v83_v23  ;;  %v818_v39 = vld [vmem:[#allocation8 + $0x88] ss:$16 sps:$4 sm:$0xff]   ;;  %v819_v40 = vld [vmem:[#allocation8 + $0xa4] ss:$16 sps:$4 sm:$0xff]   ;;  %v821_v41 = vld [vmem:[#allocation8 + $0xac] ss:$16 sps:$4 sm:$0xff]  }
  0x41   :  { %526 = vmatpush1.bf16.msra.mxu0 %v799_v26  ;;  %579 = vmatpush1.bf16.msra.mxu1 %v800_v27  ;;  %v823_v42 = vld [vmem:[#allocation8 + $0xa0] ss:$16 sps:$4 sm:$0xff]   ;;  %v824_v43 = vld [vmem:[#allocation8 + $0xa8] ss:$16 sps:$4 sm:$0xff]   ;;  %v825_v44 = vld [vmem:[#allocation8 + $0xc4] ss:$16 sps:$4 sm:$0xff]  }
  0x42   :  { %527 = vmatprep.subr.bf16.mxu0 %v801_v28  ;;  %580 = vmatprep.subr.bf16.mxu1 %v803_v29  ;;  %v827_v45 = vld [vmem:[#allocation8 + $0xcc] ss:$16 sps:$4 sm:$0xff]   ;;  %v829_v46 = vld [vmem:[#allocation8 + $0xc0] ss:$16 sps:$4 sm:$0xff]   ;;  %v830_v47 = vld [vmem:[#allocation8 + $0xc8] ss:$16 sps:$4 sm:$0xff]  }
  0x43   :  { %v831_v48 = vld [vmem:[#allocation8 + $0xe4] ss:$16 sps:$4 sm:$0xff]   ;;  %v833_v49 = vld [vmem:[#allocation8 + $0xec] ss:$16 sps:$4 sm:$0xff]   ;;  %v835_v50 = vld [vmem:[#allocation8 + $0xe0] ss:$16 sps:$4 sm:$0xff]  }
  0x44   :  { %v836_v51 = vld [vmem:[#allocation8 + $0xe8] ss:$16 sps:$4 sm:$0xff]   ;;  %v837_v52 = vld [vmem:[#allocation8 + $0x104] ss:$16 sps:$4 sm:$0xff]   ;;  %v839_v53 = vld [vmem:[#allocation8 + $0x10c] ss:$16 sps:$4 sm:$0xff]  }
  0x45   :  { %528 = vmatpush1.bf16.msra.mxu0 %v805_v30  ;;  %581 = vmatpush1.bf16.msra.mxu1 %v806_v31  ;;  %v841_v54 = vld [vmem:[#allocation8 + $0x100] ss:$16 sps:$4 sm:$0xff]   ;;  %v842_v55 = vld [vmem:[#allocation8 + $0x108] ss:$16 sps:$4 sm:$0xff]   ;;  %v843_v56 = vld [vmem:[#allocation8 + $0x124] ss:$16 sps:$4 sm:$0xff]  }
  0x46   :  { %529 = vmatprep.subr.bf16.mxu0 %v807_v32  ;;  %582 = vmatprep.subr.bf16.mxu1 %v809_v33  ;;  %v845_v57 = vld [vmem:[#allocation8 + $0x12c] ss:$16 sps:$4 sm:$0xff]   ;;  %v847_v58 = vld [vmem:[#allocation8 + $0x120] ss:$16 sps:$4 sm:$0xff]   ;;  %v848_v59 = vld [vmem:[#allocation8 + $0x128] ss:$16 sps:$4 sm:$0xff]  }
  0x47   :  { %v849_v60 = vld [vmem:[#allocation8 + $0x144] ss:$16 sps:$4 sm:$0xff]   ;;  %v851_v61 = vld [vmem:[#allocation8 + $0x14c] ss:$16 sps:$4 sm:$0xff]   ;;  %v853_v62 = vld [vmem:[#allocation8 + $0x140] ss:$16 sps:$4 sm:$0xff]  }
  0x48   :  { %v854_v63 = vld [vmem:[#allocation8 + $0x148] ss:$16 sps:$4 sm:$0xff]   ;;  %v855_v3 = vld [vmem:[#allocation8 + $0x164] ss:$16 sps:$4 sm:$0xff]   ;;  %v857_v4 = vld [vmem:[#allocation8 + $0x16c] ss:$16 sps:$4 sm:$0xff]  }
  0x49   :  { %530 = vmatpush1.bf16.msra.mxu0 %v811_v34  ;;  %583 = vmatpush1.bf16.msra.mxu1 %v812_v35  ;;  %v859_v6 = vld [vmem:[#allocation8 + $0x160] ss:$16 sps:$4 sm:$0xff]   ;;  %v860_v9 = vld [vmem:[#allocation8 + $0x168] ss:$16 sps:$4 sm:$0xff]   ;;  %v861_v10 = vld [vmem:[#allocation8 + $0x184] ss:$16 sps:$4 sm:$0xff]  }
  0x4a   :  { %531 = vmatprep.subr.bf16.mxu0 %v813_v36  ;;  %584 = vmatprep.subr.bf16.mxu1 %v815_v37  ;;  %v863_v11 = vld [vmem:[#allocation8 + $0x18c] ss:$16 sps:$4 sm:$0xff]   ;;  %v865_v14 = vld [vmem:[#allocation8 + $0x180] ss:$16 sps:$4 sm:$0xff]   ;;  %v866_v15 = vld [vmem:[#allocation8 + $0x188] ss:$16 sps:$4 sm:$0xff]  }
  0x4b   :  { %v867_v16 = vld [vmem:[#allocation8 + $0x1a4] ss:$16 sps:$4 sm:$0xff]   ;;  %v869_v17 = vld [vmem:[#allocation8 + $0x1ac] ss:$16 sps:$4 sm:$0xff]   ;;  %v871_v18 = vld [vmem:[#allocation8 + $0x1a0] ss:$16 sps:$4 sm:$0xff]  }
  0x4c   :  { %v872_v19 = vld [vmem:[#allocation8 + $0x1a8] ss:$16 sps:$4 sm:$0xff]   ;;  %v873_v20 = vld [vmem:[#allocation8 + $0x1c4] ss:$16 sps:$4 sm:$0xff]   ;;  %v875_v21 = vld [vmem:[#allocation8 + $0x1cc] ss:$16 sps:$4 sm:$0xff]  }
  0x4d   :  { %532 = vmatpush1.bf16.msra.mxu0 %v817_v38  ;;  %585 = vmatpush1.bf16.msra.mxu1 %v818_v39  ;;  %v877_v22 = vld [vmem:[#allocation8 + $0x1c0] ss:$16 sps:$4 sm:$0xff]   ;;  %v878_v23 = vld [vmem:[#allocation8 + $0x1c8] ss:$16 sps:$4 sm:$0xff]   ;;  %v879_v24 = vld [vmem:[#allocation8 + $0x1e4] ss:$16 sps:$4 sm:$0xff]   ;;  %v109_v38 = vlaneseq }
  0x4e   :  { %533 = vmatprep.subr.bf16.mxu0 %v819_v40  ;;  %586 = vmatprep.subr.bf16.mxu1 %v821_v41  ;;  %v881_v25 = vld [vmem:[#allocation8 + $0x1ec] ss:$16 sps:$4 sm:$0xff]   ;;  %v883_v26 = vld [vmem:[#allocation8 + $0x1e0] ss:$16 sps:$4 sm:$0xff]   ;;  %v884_v27 = vld [vmem:[#allocation8 + $0x1e8] ss:$16 sps:$4 sm:$0xff]  }
  0x4f   :  { %v110_v41 = vshrl.u32 %v109_v38, 7 }
  0x51   :  { %534 = vmatpush1.bf16.msra.mxu0 %v823_v42  ;;  %587 = vmatpush1.bf16.msra.mxu1 %v824_v43  ;;  %v111_v42 = vsub.s32 0, %v110_v41  ;;  %v115_v43 = vsub.s32 1, %v110_v41 }
  0x52   :  { %535 = vmatprep.subr.bf16.mxu0 %v825_v44  ;;  %588 = vmatprep.subr.bf16.mxu1 %v827_v45  ;;  %v107_v45 = vld [vmem:[#allocation6] sm:$0x3] }
  0x55   :  { %536 = vmatpush1.bf16.msra.mxu0 %v829_v46  ;;  %589 = vmatpush1.bf16.msra.mxu1 %v830_v47 }
  0x56   :  { %537 = vmatprep.subr.bf16.mxu0 %v831_v48  ;;  %590 = vmatprep.subr.bf16.mxu1 %v833_v49  ;;  %v112_v49 = vrot.slane %v107_v45, %v111_v42 }
  0x59   :  { %538 = vmatpush1.bf16.msra.mxu0 %v835_v50  ;;  %591 = vmatpush1.bf16.msra.mxu1 %v836_v51  ;;  %v116_v50 = vrot.slane %v107_v45, %v115_v43 }
  0x5a   :  { %539 = vmatprep.subr.bf16.mxu0 %v837_v52  ;;  %592 = vmatprep.subr.bf16.mxu1 %v839_v53 }
  0x5d   :  { %540 = vmatpush1.bf16.msra.mxu0 %v841_v54  ;;  %593 = vmatpush1.bf16.msra.mxu1 %v842_v55 }
  0x5e   :  { %541 = vmatprep.subr.bf16.mxu0 %v843_v56  ;;  %594 = vmatprep.subr.bf16.mxu1 %v845_v57 }
  0x61   :  { %542 = vmatpush1.bf16.msra.mxu0 %v847_v58  ;;  %595 = vmatpush1.bf16.msra.mxu1 %v848_v59 }
  0x62   :  { %543 = vmatprep.subr.bf16.mxu0 %v849_v60  ;;  %596 = vmatprep.subr.bf16.mxu1 %v851_v61 }
  0x65   :  { %544 = vmatpush1.bf16.msra.mxu0 %v853_v62  ;;  %597 = vmatpush1.bf16.msra.mxu1 %v854_v63 }
  0x66   :  { %545 = vmatprep.subr.bf16.mxu0 %v855_v3  ;;  %598 = vmatprep.subr.bf16.mxu1 %v857_v4 }
  0x69   :  { %546 = vmatpush1.bf16.msra.mxu0 %v859_v6  ;;  %599 = vmatpush1.bf16.msra.mxu1 %v860_v9 }
  0x6a   :  { %547 = vmatprep.subr.bf16.mxu0 %v861_v10  ;;  %600 = vmatprep.subr.bf16.mxu1 %v863_v11 }
  0x6d   :  { %548 = vmatpush1.bf16.msra.mxu0 %v865_v14  ;;  %601 = vmatpush1.bf16.msra.mxu1 %v866_v15 }
  0x6e   :  { %549 = vmatprep.subr.bf16.mxu0 %v867_v16  ;;  %602 = vmatprep.subr.bf16.mxu1 %v869_v17 }
  0x71   :  { %550 = vmatpush1.bf16.msra.mxu0 %v871_v18  ;;  %603 = vmatpush1.bf16.msra.mxu1 %v872_v19 }
  0x72   :  { %551 = vmatprep.subr.bf16.mxu0 %v873_v20  ;;  %604 = vmatprep.subr.bf16.mxu1 %v875_v21 }
  0x75   :  { %552 = vmatpush1.bf16.msra.mxu0 %v877_v22  ;;  %605 = vmatpush1.bf16.msra.mxu1 %v878_v23 }
  0x76   :  { %553 = vmatprep.subr.bf16.mxu0 %v879_v24  ;;  %606 = vmatprep.subr.bf16.mxu1 %v881_v25 }
  0x79   :  { %554 = vmatpush1.bf16.msra.mxu0 %v883_v26  ;;  %607 = vmatpush1.bf16.msra.mxu1 %v884_v27 }
  0xc8   :  { %v76_v28 = vpop.xlane.xlu0 %75 }
  0xc9   :  { %v87_v29 = vmul.f32 0.00390625, %v76_v28  ;;  %v82_v30 = vpop.xlane.xlu1 %81 }
  0xca   :  { %v89_v31 = vmul.f32 0.00390625, %v82_v30 }
  0xcb   :  { %v91_v32 = vadd.f32 1e-06, %v87_v29 }
  0xcc   :  { %v93_v33 = vadd.f32 1e-06, %v89_v31  ;;  %v79_v34 = vpop.xlane.xlu0 %78 }
  0xcd   :  { %885 = vrsqrt.f32 %v91_v32  ;;  %v88_v35 = vmul.f32 0.00390625, %v79_v34  ;;  %v85_v36 = vpop.xlane.xlu1 %84 }
  0xce   :  { %887 = vrsqrt.f32 %v93_v33  ;;  %v90_v37 = vmul.f32 0.00390625, %v85_v36 }
  0xcf   :  { %v92_v39 = vadd.f32 1e-06, %v88_v35 }
  0xd0   :  { %v94_v40 = vadd.f32 1e-06, %v90_v37 }
  0xd1   :  { %889 = vrsqrt.f32 %v92_v39 }
  0xd2   :  { %891 = vrsqrt.f32 %v94_v40 }
  0xd7   :  { %v886_v44 = vpop.eup %885 }
  0xd8   :  { %v888_v46 = vpop.eup %887  ;;  %v100_v48 = vmul.f32 %v886_v44, %v1064_v1  ;;  %v99_v51 = vmul.f32 %v886_v44, %v1062_v0 }
  0xd9   :  { %v104_v47 = vmul.f32 %v888_v46, %v1072_v5  ;;  %v103_v3 = vmul.f32 %v888_v46, %v1066_v2 }
  0xda   :  { %v120_v58 = vmul.f32 %v116_v50, %v100_v48  ;;  %v119_v60 = vmul.f32 %v112_v49, %v99_v51 }
  0xdb   :  { %v890_v52 = vpop.eup %889  ;;  %v124_v57 = vmul.f32 %v116_v50, %v104_v47 }
  0xdc   :  { %v892_v53 = vpop.eup %891  ;;  %v102_v54 = vmul.f32 %v890_v52, %v1078_v8  ;;  %v101_v55 = vmul.f32 %v890_v52, %v1076_v7  ;;  %v123_v7 = vmul.f32 %v112_v49, %v103_v3 }
  0xdd   :  { %v106_v56 = vmul.f32 %v892_v53, %v1088_v13  ;;  %v105_v0 = vmul.f32 %v892_v53, %v1086_v12 }
  0xde   :  { %v122_v59 = vmul.f32 %v116_v50, %v102_v54  ;;  %v121_v61 = vmul.f32 %v112_v49, %v101_v55 }
  0xdf   :  { %v126_v5 = vmul.f32 %v116_v50, %v106_v56  ;;  %v125_v8 = vmul.f32 %v112_v49, %v105_v0 }
  0xe0   :  { %v128_v62 = vpack.c.bf16 %v122_v59, %v120_v58  ;;  %v127_v1 = vpack.c.bf16 %v121_v61, %v119_v60 }
  0xe1   :  { %v130_v63 = vpack.c.bf16 %v126_v5, %v124_v57  ;;  %v129_v13 = vpack.c.bf16 %v125_v8, %v123_v7 }
  0xe2   :  { %555 = vmatprep.mubr.bf16.mxu0 %v128_v62  ;;  %608 = vmatprep.mubr.bf16.mxu1 %v128_v62 }
  0xe3   :  { %556 = vmatmul.mubr.bf16.vlgmr.msra.gmra.mrb[0].mxu0 %v127_v1  ;;  %609 = vmatmul.mubr.bf16.vlgmr.msra.gmra.mrb[0].mxu1 %v127_v1 }
  0xe4   :  { %565 = vmatprep.mubr.bf16.mxu0 %v130_v63  ;;  %618 = vmatprep.mubr.bf16.mxu1 %v130_v63 }
  0xeb   :  { %566 = vmatmul.mubr.bf16.gmra.mrb[4].mxu0 %v129_v13  ;;  %619 = vmatmul.mubr.bf16.gmra.mrb[4].mxu1 %v129_v13 }
 0x1b6   :  { %v557_v4 = vpop.f32.mrb[0].mxu0  ;;  %v610_v6 = vpop.f32.mrb[0].mxu1 }
 0x1b7   :  { %v559_v9 = vpop.f32.mrb[1].mxu0  ;;  %v612_v10 = vpop.f32.mrb[1].mxu1 }
 0x1b8   :  { %v775_v11 = vpack.c.bf16 %v559_v9, %v557_v4  ;;  %v776_v14 = vpack.c.bf16 %v612_v10, %v610_v6  ;;  %v561_v2 = vpop.f32.mrb[2].mxu0  ;;  %v614_v15 = vpop.f32.mrb[2].mxu1 }
 0x1b9   :  { %v563_v12 = vpop.f32.mrb[3].mxu0  ;;  %v616_v16 = vpop.f32.mrb[3].mxu1 }
 0x1ba   :  { %677 = vst [vmem:[#allocation9] sm:$0xff] %v775_v11  ;;  %678 = vst [vmem:[#allocation9 + $0x8] sm:$0xff] %v776_v14  ;;  %v777_v17 = vpack.c.bf16 %v563_v12, %v561_v2  ;;  %v778_v18 = vpack.c.bf16 %v616_v16, %v614_v15 }
 0x1bc   :  { %679 = vst [vmem:[#allocation9 + $0x10] sm:$0xff] %v777_v17  ;;  %680 = vst [vmem:[#allocation9 + $0x18] sm:$0xff] %v778_v18 }
 0x1be   :  { %v567_v19 = vpop.f32.mrb[4].mxu0  ;;  %v620_v20 = vpop.f32.mrb[4].mxu1 }
 0x1bf   :  { %v569_v21 = vpop.f32.mrb[5].mxu0  ;;  %v622_v22 = vpop.f32.mrb[5].mxu1 }
 0x1c0   :  { %v779_v23 = vpack.c.bf16 %v569_v21, %v567_v19  ;;  %v780_v24 = vpack.c.bf16 %v622_v22, %v620_v20  ;;  %v571_v25 = vpop.f32.mrb[6].mxu0  ;;  %v624_v26 = vpop.f32.mrb[6].mxu1 }
 0x1c1   :  { %v573_v27 = vpop.f32.mrb[7].mxu0  ;;  %v626_v28 = vpop.f32.mrb[7].mxu1 }
 0x1c2   :  { %681 = vst [vmem:[#allocation9 + $0x20] sm:$0xff] %v779_v23  ;;  %682 = vst [vmem:[#allocation9 + $0x28] sm:$0xff] %v780_v24  ;;  %v781_v29 = vpack.c.bf16 %v573_v27, %v571_v25  ;;  %v782_v30 = vpack.c.bf16 %v626_v28, %v624_v26 }
 0x1c4   :  { %683 = vst [vmem:[#allocation9 + $0x30] sm:$0xff] %v781_v29  ;;  %684 = vst [vmem:[#allocation9 + $0x38] sm:$0xff] %v782_v30 }
 0x1c5   :  { %970 = shalt.err (!%p967_p0)
}
 0x1c6   :  { %s971_s25 = scalar_lea.hbm %s1120_s3, 1024 }
 0x1c7   :  { %p972_p1 = scmp.ne.s32.totalorder %s1120_s3, %s971_s25  ;;  %p975_p2 = scmp.lt.u32.totalorder %s971_s25, %s1120_s3 }
 0x1c9   :  { %p977_p3 = pnand %p975_p2, %p972_p1 }
 0x1cb   :  { %980 = shalt.err (!%p977_p3)
}
 0x1cc   :  { %696 = dma.vmem_to_hbm [thread:$0]  %s691_s21, 1024, %s1120_s3, [#allocation5], %s989_s1, %s989_s1, %s990_s7  }
 0x1cd   :  { %985 = dma.done.wait [#allocation5], 1024  }
 0x1ce   :  { %986 = vsyncadd [#allocation5], 4294966272 }
 0x1cf   :  { %700 = vsyncpa [#allocation4], 1 }
 0x1d0   :  { %701 = vsyncpa [#allocation7], 1 }
 0x1d1   :  { %702 = vsyncpa [#allocation5], 1 }

</bundles_post_ra>
